<compile_context>
chip_gen: v6e
topology: v6e:2x2x1
jax: 0.10.0
libtpu: 0.0.40
codegen_flags: <defaults>
</compile_context>

<pallas_src>
import functools

import jax
import jax.numpy as jnp
from jax.experimental import pallas as pl
from jax.experimental.pallas import tpu as pltpu

_SQRT_2_OVER_PI = 0.7978845608028654


def _gelu_tanh(x):
    """tanh-approx GELU; polynomial in x.dtype, tanh bridged through f32.

    Matches jax.nn.gelu(approximate=True) for f32 inputs; for bf16 inputs the
    VPU work stays bf16 while the transcendental runs in f32 (safe lowering on
    all TPU generations).
    """
    c0 = jnp.asarray(_SQRT_2_OVER_PI, x.dtype)
    c1 = jnp.asarray(0.044715, x.dtype)
    inner = c0 * (x + c1 * (x * x * x))
    t = jnp.tanh(inner.astype(jnp.float32)).astype(x.dtype)
    return jnp.asarray(0.5, x.dtype) * x * (1.0 + t)


def _bert_query_ner_kernel(seq_i_ref, seq_j_ref, wse_ref, bse_ref,
                           w1a_ref, w1b_ref, b1_ref, w2t_ref, b2_ref,
                           start_ref, end_ref, span_ref, a_scr,
                           *, ck, nk):
    j = pl.program_id(2)

    # ---- Once per (batch, i-tile): token classifiers + hoisted row projection.
    @pl.when(j == 0)
    def _():
        x_i = seq_i_ref[0]                                            # [TI, H]
        # Fused start/end classifiers: one [H, 4] matmul instead of two [H, 2].
        logits = (jnp.dot(x_i, wse_ref[...],
                          preferred_element_type=jnp.float32) + bse_ref[...])
        start_ref[0] = (logits[:, 1:2] > logits[:, 0:1]).astype(jnp.int32)
        end_ref[0] = (logits[:, 3:4] > logits[:, 2:3]).astype(jnp.int32)
        # Row projection x_i @ W1a + b1, reused across the whole j loop.
        a = (jnp.dot(x_i, w1a_ref[...],
                     preferred_element_type=jnp.float32) + b1_ref[...])
        a_scr[...] = a.astype(a_scr.dtype)

    # ---- Column projection for this j-tile (MXU work that overlaps the
    #      EUP/VPU-bound span math; redundancy is only S/TI per batch).
    b_proj = jnp.dot(seq_j_ref[0], w1b_ref[...],
                     preferred_element_type=jnp.float32).astype(a_scr.dtype)

    ti = a_scr.shape[0]
    tj = b_proj.shape[0]

    # ---- Span tile: stream the 2H contraction in ck-wide chunks so only a
    #      [TI, TJ, ck] intermediate is ever live; accumulate in f32.
    span_acc = jnp.zeros((ti, tj), jnp.float32)
    for k in range(nk):
        k0 = k * ck
        a_c = a_scr[:, k0:k0 + ck]                                    # [TI, ck]
        b_c = b_proj[:, k0:k0 + ck]                                   # [TJ, ck]
        w2_c = w2t_ref[:, k0:k0 + ck].astype(a_scr.dtype).reshape(1, 1, ck)
        h = _gelu_tanh(a_c[:, None, :] + b_c[None, :, :])             # [TI,TJ,ck]
        span_acc = span_acc + jnp.sum(h * w2_c, axis=-1, dtype=jnp.float32)

    span_ref[0] = jax.nn.sigmoid(span_acc + b2_ref[0])


def _pick_tile(dim, cap, quantum):
    """Largest tile <= cap that divides `dim` and is a multiple of `quantum`;
    falls back to the full dimension (always a legal Mosaic block)."""
    if dim <= cap:
        return dim
    for cand in range(cap, 0, -1):
        if dim % cand == 0 and cand % quantum == 0:
            return cand
    return dim


def bert_query_ner_forward(sequence_output, params, *,
                           span_compute_dtype=jnp.float32,
                           ti_cap=64, tj_cap=128, ck_cap=256):
    """Inference forward of BertQueryNER given the BERT encoder output."""
    B, S, H = sequence_output.shape
    ws, bs, we, be, w1, b1, w2, b2 = params
    two_h = 2 * H

    # Fused start/end token classifier: single [H, 4] weight / [1, 4] bias.
    wse = jnp.concatenate([ws, we], axis=1)                       # [H, 4]
    bse = jnp.concatenate([bs, be], axis=0).reshape(1, 4)         # [1, 4]
    # classifier1 of the span head, split along its concat input dim.
    w1a, w1b = w1[:H, :], w1[H:, :]                               # [H, 2H] each
    w2t = w2.reshape(1, two_h)                                    # [1, 2H]

    ti = _pick_tile(S, ti_cap, 8)
    tj = _pick_tile(S, tj_cap, 128)          # lane-dense span stores at scale
    ck = _pick_tile(two_h, ck_cap, 128)
    nk = two_h // ck
    n_i, n_j = S // ti, S // tj

    kernel = functools.partial(_bert_query_ner_kernel, ck=ck, nk=nk)

    itemsize = jnp.dtype(span_compute_dtype).itemsize
    vmem_est = (4 * 2 * (ti + tj) * H            # seq tiles, double-buffered
                + 4 * 2 * 2 * H * two_h          # W1a / W1b, double-buffered
                + itemsize * (ti + tj) * two_h   # a_scr scratch + b_proj
                + 3 * itemsize * ti * tj * ck    # chunk-loop temporaries
                + 4 * 2 * ti * tj)               # span out tile, double-buffered
    compiler_kwargs = dict(
        dimension_semantics=("parallel", "parallel", "arbitrary"))
    if vmem_est > 16 * 1024 * 1024:
        # Only raise the scoped-VMEM limit when the problem actually needs it
        # (keeps small/test shapes on the default path); capped for v7x (64 MiB).
        compiler_kwargs["vmem_limit_bytes"] = int(
            min(1.5 * vmem_est, 64 * 1024 * 1024))

    start_pred, end_pred, span_sig = pl.pallas_call(
        kernel,
        out_shape=(
            jax.ShapeDtypeStruct((B, S, 1), jnp.int32),
            jax.ShapeDtypeStruct((B, S, 1), jnp.int32),
            jax.ShapeDtypeStruct((B, S, S), jnp.float32),
        ),
        grid_spec=pltpu.PrefetchScalarGridSpec(
            num_scalar_prefetch=0,
            grid=(B, n_i, n_j),
            in_specs=[
                pl.BlockSpec((1, ti, H), lambda b, i, j: (b, i, 0)),   # row tile
                pl.BlockSpec((1, tj, H), lambda b, i, j: (b, j, 0)),   # col tile
                pl.BlockSpec((H, 4), lambda b, i, j: (0, 0)),          # fused W_se
                pl.BlockSpec((1, 4), lambda b, i, j: (0, 0)),          # fused b_se
                pl.BlockSpec((H, two_h), lambda b, i, j: (0, 0)),      # W1a
                pl.BlockSpec((H, two_h), lambda b, i, j: (0, 0)),      # W1b
                pl.BlockSpec((1, two_h), lambda b, i, j: (0, 0)),      # b1
                pl.BlockSpec((1, two_h), lambda b, i, j: (0, 0)),      # W2^T
                pl.BlockSpec(memory_space=pltpu.MemorySpace.SMEM),     # b2 scalar
            ],
            out_specs=[
                pl.BlockSpec((1, ti, 1), lambda b, i, j: (b, i, 0)),
                pl.BlockSpec((1, ti, 1), lambda b, i, j: (b, i, 0)),
                pl.BlockSpec((1, ti, tj), lambda b, i, j: (b, i, j)),
            ],
            scratch_shapes=[pltpu.VMEM((ti, two_h), span_compute_dtype)],
        ),
        compiler_params=pltpu.CompilerParams(**compiler_kwargs),
    )(sequence_output, sequence_output, wse, bse, w1a, w1b,
      b1.reshape(1, two_h), w2t, b2)

    return start_pred[..., 0], end_pred[..., 0], span_sig


def reference_forward(seq, params):
    ws, bs, we, be, w1, b1, w2, b2 = params
    B, S, H = seq.shape
    start = seq @ ws + bs
    end = seq @ we + be
    start_extend = jnp.broadcast_to(seq[:, :, None, :], (B, S, S, H))
    end_extend = jnp.broadcast_to(seq[:, None, :, :], (B, S, S, H))
    span_matrix = jnp.concatenate([start_extend, end_extend], axis=-1)
    h = jax.nn.gelu(span_matrix @ w1 + b1)        # tanh approximation
    span = (h @ w2)[..., 0] + b2[0]
    return (jnp.argmax(start, -1), jnp.argmax(end, -1), jax.nn.sigmoid(span))


if __name__ == "__main__":
    B, S, H = 2, 8, 32   # batch, seq_len, hidden_size

    key = jax.random.PRNGKey(0)
    ks = jax.random.split(key, 9)
    sequence_output = jax.random.normal(ks[0], (B, S, H), jnp.float32)

    # Deterministic synthetic parameters (shapes follow BertQueryNER.__init__).
    params = (
        jax.random.normal(ks[1], (H, 2), jnp.float32) * 0.1,          # start W
        jax.random.normal(ks[2], (2,), jnp.float32) * 0.1,            # start b
        jax.random.normal(ks[3], (H, 2), jnp.float32) * 0.1,          # end W
        jax.random.normal(ks[4], (2,), jnp.float32) * 0.1,            # end b
        jax.random.normal(ks[5], (2 * H, 2 * H), jnp.float32) * 0.1,  # cls1 W
        jax.random.normal(ks[6], (2 * H,), jnp.float32) * 0.1,        # cls1 b
        jax.random.normal(ks[7], (2 * H, 1), jnp.float32) * 0.1,      # cls2 W
        jax.random.normal(ks[8], (1,), jnp.float32) * 0.1,            # cls2 b
    )

    start_ref, end_ref, span_ref = reference_forward(sequence_output, params)

    # Full-precision span path (v5e-style config): tight check.
    start_pred, end_pred, span_sig = jax.block_until_ready(
        bert_query_ner_forward(sequence_output, params))
    assert jnp.array_equal(start_pred, start_ref)
    assert jnp.array_equal(end_pred, end_ref)
    assert jnp.allclose(span_sig, span_ref, atol=1e-5, rtol=1e-5)

    # bfloat16 span path (v6e/v7x recommendation); f32 accumulation, loose check.
    start16, end16, span16 = jax.block_until_ready(
        bert_query_ner_forward(sequence_output, params,
                               span_compute_dtype=jnp.bfloat16))
    assert jnp.array_equal(start16, start_ref)
    assert jnp.array_equal(end16, end_ref)
    assert jnp.allclose(span16, span_ref, atol=5e-2)

    print("KERNEL_OK")
</pallas_src>

<mosaic_0001>
module attributes {stable_mosaic.version = 11 : i64} {
  func.func @_bert_query_ner_kernel(%arg0: i32, %arg1: i32, %arg2: i32, %arg3: memref<1x8x32xf32, #tpu.memory_space<vmem>>, %arg4: memref<1x8x32xf32, #tpu.memory_space<vmem>>, %arg5: memref<32x4xf32, #tpu.memory_space<vmem>>, %arg6: memref<1x4xf32, #tpu.memory_space<vmem>>, %arg7: memref<32x64xf32, #tpu.memory_space<vmem>>, %arg8: memref<32x64xf32, #tpu.memory_space<vmem>>, %arg9: memref<1x64xf32, #tpu.memory_space<vmem>>, %arg10: memref<1x64xf32, #tpu.memory_space<vmem>>, %arg11: memref<1xf32, #tpu.memory_space<smem>>, %arg12: memref<1x8x1xi32, #tpu.memory_space<vmem>>, %arg13: memref<1x8x1xi32, #tpu.memory_space<vmem>>, %arg14: memref<1x8x8xf32, #tpu.memory_space<vmem>>, %arg15: memref<8x64xf32, #tpu.memory_space<vmem>>) attributes {dimension_semantics = [#tpu.dimension_semantics<parallel>, #tpu.dimension_semantics<parallel>, #tpu.dimension_semantics<arbitrary>], iteration_bounds = array<i64: 2, 1, 1>, scalar_prefetch = 0 : i64, scratch_operands = 1 : i64, tpu.core_type = #tpu.core_type<tc>, window_params = [{transform_indices = @transform_0, window_bounds = array<i64: 1, 8, 32>}, {transform_indices = @transform_1, window_bounds = array<i64: 1, 8, 32>}, {pipeline_mode = #tpu.pipeline_mode<synchronous>, transform_indices = @transform_2, window_bounds = array<i64: 32, 4>}, {pipeline_mode = #tpu.pipeline_mode<synchronous>, transform_indices = @transform_3, window_bounds = array<i64: 1, 4>}, {pipeline_mode = #tpu.pipeline_mode<synchronous>, transform_indices = @transform_4, window_bounds = array<i64: 32, 64>}, {pipeline_mode = #tpu.pipeline_mode<synchronous>, transform_indices = @transform_5, window_bounds = array<i64: 32, 64>}, {pipeline_mode = #tpu.pipeline_mode<synchronous>, transform_indices = @transform_6, window_bounds = array<i64: 1, 64>}, {pipeline_mode = #tpu.pipeline_mode<synchronous>, transform_indices = @transform_7, window_bounds = array<i64: 1, 64>}, {transform_indices = @transform_8, window_bounds = array<i64: 1>}, {transform_indices = @transform_9, window_bounds = array<i64: 1, 8, 1>}, {transform_indices = @transform_10, window_bounds = array<i64: 1, 8, 1>}, {transform_indices = @transform_11, window_bounds = array<i64: 1, 8, 8>}]} {
    %c0_i32 = arith.constant 0 : i32
    %0 = arith.cmpi eq, %arg2, %c0_i32 : i32
    %1 = arith.extui %0 : i1 to i32
    %c0_i32_0 = arith.constant 0 : i32
    %2 = arith.cmpi ne, %1, %c0_i32_0 : i32
    scf.if %2 {
      %c0_20 = arith.constant 0 : index
      %c0_21 = arith.constant 0 : index
      %c0_22 = arith.constant 0 : index
      %44 = vector.load %arg3[%c0_20, %c0_21, %c0_22] : memref<1x8x32xf32, #tpu.memory_space<vmem>>, vector<1x8x32xf32>
      %45 = vector.shape_cast %44 : vector<1x8x32xf32> to vector<8x32xf32>
      %c0_23 = arith.constant 0 : index
      %c0_24 = arith.constant 0 : index
      %46 = vector.load %arg5[%c0_23, %c0_24] : memref<32x4xf32, #tpu.memory_space<vmem>>, vector<32x4xf32>
      %cst_25 = arith.constant dense<0.000000e+00> : vector<8x4xf32>
      %47 = tpu.matmul %45, %46, %cst_25 {dimension_numbers = #tpu.dot_dimension_numbers<[1], [0], [0], [1], [0, 0, 1, 1], [], []>} : vector<8x32xf32>, vector<32x4xf32>, vector<8x4xf32> -> vector<8x4xf32>
      %c0_26 = arith.constant 0 : index
      %c0_27 = arith.constant 0 : index
      %48 = vector.load %arg6[%c0_26, %c0_27] : memref<1x4xf32, #tpu.memory_space<vmem>>, vector<1x4xf32>
      %49 = vector.broadcast %48 : vector<1x4xf32> to vector<8x4xf32>
      %50 = arith.addf %47, %49 : vector<8x4xf32>
      %51 = vector.extract_strided_slice %50 {offsets = [0, 1], sizes = [8, 1], strides = [1, 1]} : vector<8x4xf32> to vector<8x1xf32>
      %52 = vector.extract_strided_slice %50 {offsets = [0, 0], sizes = [8, 1], strides = [1, 1]} : vector<8x4xf32> to vector<8x1xf32>
      %53 = arith.cmpf ogt, %51, %52 : vector<8x1xf32>
      %54 = arith.extui %53 : vector<8x1xi1> to vector<8x1xi32>
      %c0_28 = arith.constant 0 : index
      %c0_29 = arith.constant 0 : index
      %c0_30 = arith.constant 0 : index
      %55 = vector.load %arg12[%c0_28, %c0_29, %c0_30] : memref<1x8x1xi32, #tpu.memory_space<vmem>>, vector<1x8x1xi32>
      %56 = vector.shape_cast %55 : vector<1x8x1xi32> to vector<8x1xi32>
      %57 = vector.shape_cast %54 : vector<8x1xi32> to vector<1x8x1xi32>
      tpu.vector_store %arg12[%c0_28, %c0_29, %c0_30], %57 {strides = array<i32>} : memref<1x8x1xi32, #tpu.memory_space<vmem>>, vector<1x8x1xi32>,
      %58 = vector.extract_strided_slice %50 {offsets = [0, 3], sizes = [8, 1], strides = [1, 1]} : vector<8x4xf32> to vector<8x1xf32>
      %59 = vector.extract_strided_slice %50 {offsets = [0, 2], sizes = [8, 1], strides = [1, 1]} : vector<8x4xf32> to vector<8x1xf32>
      %60 = arith.cmpf ogt, %58, %59 : vector<8x1xf32>
      %61 = arith.extui %60 : vector<8x1xi1> to vector<8x1xi32>
      %c0_31 = arith.constant 0 : index
      %c0_32 = arith.constant 0 : index
      %c0_33 = arith.constant 0 : index
      %62 = vector.load %arg13[%c0_31, %c0_32, %c0_33] : memref<1x8x1xi32, #tpu.memory_space<vmem>>, vector<1x8x1xi32>
      %63 = vector.shape_cast %62 : vector<1x8x1xi32> to vector<8x1xi32>
      %64 = vector.shape_cast %61 : vector<8x1xi32> to vector<1x8x1xi32>
      tpu.vector_store %arg13[%c0_31, %c0_32, %c0_33], %64 {strides = array<i32>} : memref<1x8x1xi32, #tpu.memory_space<vmem>>, vector<1x8x1xi32>,
      %c0_34 = arith.constant 0 : index
      %c0_35 = arith.constant 0 : index
      %65 = vector.load %arg7[%c0_34, %c0_35] : memref<32x64xf32, #tpu.memory_space<vmem>>, vector<32x64xf32>
      %cst_36 = arith.constant dense<0.000000e+00> : vector<8x64xf32>
      %66 = tpu.matmul %45, %65, %cst_36 {dimension_numbers = #tpu.dot_dimension_numbers<[1], [0], [0], [1], [0, 0, 1, 1], [], []>} : vector<8x32xf32>, vector<32x64xf32>, vector<8x64xf32> -> vector<8x64xf32>
      %c0_37 = arith.constant 0 : index
      %c0_38 = arith.constant 0 : index
      %67 = vector.load %arg9[%c0_37, %c0_38] : memref<1x64xf32, #tpu.memory_space<vmem>>, vector<1x64xf32>
      %68 = vector.broadcast %67 : vector<1x64xf32> to vector<8x64xf32>
      %69 = arith.addf %66, %68 : vector<8x64xf32>
      %c0_39 = arith.constant 0 : index
      %c0_40 = arith.constant 0 : index
      %70 = vector.load %arg15[%c0_39, %c0_40] : memref<8x64xf32, #tpu.memory_space<vmem>>, vector<8x64xf32>
      tpu.vector_store %arg15[%c0_39, %c0_40], %69 {strides = array<i32>} : memref<8x64xf32, #tpu.memory_space<vmem>>, vector<8x64xf32>,
    } else {
    }
    %c0 = arith.constant 0 : index
    %c0_1 = arith.constant 0 : index
    %c0_2 = arith.constant 0 : index
    %3 = vector.load %arg4[%c0, %c0_1, %c0_2] : memref<1x8x32xf32, #tpu.memory_space<vmem>>, vector<1x8x32xf32>
    %4 = vector.shape_cast %3 : vector<1x8x32xf32> to vector<8x32xf32>
    %c0_3 = arith.constant 0 : index
    %c0_4 = arith.constant 0 : index
    %5 = vector.load %arg8[%c0_3, %c0_4] : memref<32x64xf32, #tpu.memory_space<vmem>>, vector<32x64xf32>
    %cst = arith.constant dense<0.000000e+00> : vector<8x64xf32>
    %6 = tpu.matmul %4, %5, %cst {dimension_numbers = #tpu.dot_dimension_numbers<[1], [0], [0], [1], [0, 0, 1, 1], [], []>} : vector<8x32xf32>, vector<32x64xf32>, vector<8x64xf32> -> vector<8x64xf32>
    %cst_5 = arith.constant 0.000000e+00 : f32
    %7 = vector.broadcast %cst_5 : f32 to vector<8x8xf32>
    %c0_6 = arith.constant 0 : index
    %c0_7 = arith.constant 0 : index
    %8 = vector.load %arg15[%c0_6, %c0_7] : memref<8x64xf32, #tpu.memory_space<vmem>>, vector<8x64xf32>
    %c0_8 = arith.constant 0 : index
    %c0_9 = arith.constant 0 : index
    %9 = vector.load %arg10[%c0_8, %c0_9] : memref<1x64xf32, #tpu.memory_space<vmem>>, vector<1x64xf32>
    %10 = vector.shape_cast %9 : vector<1x64xf32> to vector<1x1x64xf32>
    %11 = vector.shape_cast %8 : vector<8x64xf32> to vector<8x1x64xf32>
    %12 = vector.shape_cast %6 : vector<8x64xf32> to vector<1x8x64xf32>
    %13 = vector.broadcast %11 : vector<8x1x64xf32> to vector<8x8x64xf32>
    %14 = vector.broadcast %12 : vector<1x8x64xf32> to vector<8x8x64xf32>
    %15 = arith.addf %13, %14 : vector<8x8x64xf32>
    %16 = arith.mulf %15, %15 : vector<8x8x64xf32>
    %17 = arith.mulf %16, %15 : vector<8x8x64xf32>
    %cst_10 = arith.constant 4.471500e-02 : f32
    %18 = vector.broadcast %cst_10 : f32 to vector<8x8x64xf32>
    %19 = arith.mulf %18, %17 : vector<8x8x64xf32>
    %20 = arith.addf %15, %19 : vector<8x8x64xf32>
    %cst_11 = arith.constant 0.797884583 : f32
    %21 = vector.broadcast %cst_11 : f32 to vector<8x8x64xf32>
    %22 = arith.mulf %21, %20 : vector<8x8x64xf32>
    %23 = math.tanh %22 : vector<8x8x64xf32>
    %cst_12 = arith.constant 5.000000e-01 : f32
    %24 = vector.broadcast %cst_12 : f32 to vector<8x8x64xf32>
    %25 = arith.mulf %24, %15 : vector<8x8x64xf32>
    %cst_13 = arith.constant 1.000000e+00 : f32
    %26 = vector.broadcast %cst_13 : f32 to vector<8x8x64xf32>
    %27 = arith.addf %26, %23 : vector<8x8x64xf32>
    %28 = arith.mulf %25, %27 : vector<8x8x64xf32>
    %29 = vector.broadcast %10 : vector<1x1x64xf32> to vector<8x8x64xf32>
    %30 = arith.mulf %28, %29 : vector<8x8x64xf32>
    %cst_14 = arith.constant dense<0.000000e+00> : vector<8x8xf32>
    %31 = vector.multi_reduction <add>, %30, %cst_14 [2] : vector<8x8x64xf32> to vector<8x8xf32>
    %32 = arith.addf %7, %31 : vector<8x8xf32>
    %c0_15 = arith.constant 0 : index
    %33 = memref.load %arg11[%c0_15] : memref<1xf32, #tpu.memory_space<smem>>
    %34 = vector.broadcast %33 : f32 to vector<8x8xf32>
    %35 = arith.addf %32, %34 : vector<8x8xf32>
    %36 = arith.negf %35 : vector<8x8xf32>
    %37 = math.exp %36 : vector<8x8xf32>
    %cst_16 = arith.constant 1.000000e+00 : f32
    %38 = vector.broadcast %cst_16 : f32 to vector<8x8xf32>
    %39 = arith.addf %38, %37 : vector<8x8xf32>
    %40 = arith.divf %38, %39 : vector<8x8xf32>
    %c0_17 = arith.constant 0 : index
    %c0_18 = arith.constant 0 : index
    %c0_19 = arith.constant 0 : index
    %41 = vector.load %arg14[%c0_17, %c0_18, %c0_19] : memref<1x8x8xf32, #tpu.memory_space<vmem>>, vector<1x8x8xf32>
    %42 = vector.shape_cast %41 : vector<1x8x8xf32> to vector<8x8xf32>
    %43 = vector.shape_cast %40 : vector<8x8xf32> to vector<1x8x8xf32>
    tpu.vector_store %arg14[%c0_17, %c0_18, %c0_19], %43 {strides = array<i32>} : memref<1x8x8xf32, #tpu.memory_space<vmem>>, vector<1x8x8xf32>,
    return
  }
  func.func @transform_0(%arg0: i32, %arg1: i32, %arg2: i32) -> (i32, i32, i32) {
    %c0_i32 = arith.constant 0 : i32
    %c0_i32_0 = arith.constant 0 : i32
    return %arg0, %arg1, %c0_i32 : i32, i32, i32
  }
  func.func @transform_1(%arg0: i32, %arg1: i32, %arg2: i32) -> (i32, i32, i32) {
    %c0_i32 = arith.constant 0 : i32
    %c0_i32_0 = arith.constant 0 : i32
    return %arg0, %arg2, %c0_i32 : i32, i32, i32
  }
  func.func @transform_2(%arg0: i32, %arg1: i32, %arg2: i32) -> (i32, i32) {
    %c0_i32 = arith.constant 0 : i32
    %c0_i32_0 = arith.constant 0 : i32
    %c0_i32_1 = arith.constant 0 : i32
    return %c0_i32, %c0_i32_0 : i32, i32
  }
  func.func @transform_3(%arg0: i32, %arg1: i32, %arg2: i32) -> (i32, i32) {
    %c0_i32 = arith.constant 0 : i32
    %c0_i32_0 = arith.constant 0 : i32
    %c0_i32_1 = arith.constant 0 : i32
    return %c0_i32, %c0_i32_0 : i32, i32
  }
  func.func @transform_4(%arg0: i32, %arg1: i32, %arg2: i32) -> (i32, i32) {
    %c0_i32 = arith.constant 0 : i32
    %c0_i32_0 = arith.constant 0 : i32
    %c0_i32_1 = arith.constant 0 : i32
    return %c0_i32, %c0_i32_0 : i32, i32
  }
  func.func @transform_5(%arg0: i32, %arg1: i32, %arg2: i32) -> (i32, i32) {
    %c0_i32 = arith.constant 0 : i32
    %c0_i32_0 = arith.constant 0 : i32
    %c0_i32_1 = arith.constant 0 : i32
    return %c0_i32, %c0_i32_0 : i32, i32
  }
  func.func @transform_6(%arg0: i32, %arg1: i32, %arg2: i32) -> (i32, i32) {
    %c0_i32 = arith.constant 0 : i32
    %c0_i32_0 = arith.constant 0 : i32
    %c0_i32_1 = arith.constant 0 : i32
    return %c0_i32, %c0_i32_0 : i32, i32
  }
  func.func @transform_7(%arg0: i32, %arg1: i32, %arg2: i32) -> (i32, i32) {
    %c0_i32 = arith.constant 0 : i32
    %c0_i32_0 = arith.constant 0 : i32
    %c0_i32_1 = arith.constant 0 : i32
    return %c0_i32, %c0_i32_0 : i32, i32
  }
  func.func @transform_8(%arg0: i32, %arg1: i32, %arg2: i32) -> i32 {
    %c0_i32 = arith.constant 0 : i32
    %c0_i32_0 = arith.constant 0 : i32
    return %c0_i32 : i32
  }
  func.func @transform_9(%arg0: i32, %arg1: i32, %arg2: i32) -> (i32, i32, i32) {
    %c0_i32 = arith.constant 0 : i32
    %c0_i32_0 = arith.constant 0 : i32
    return %arg0, %arg1, %c0_i32 : i32, i32, i32
  }
  func.func @transform_10(%arg0: i32, %arg1: i32, %arg2: i32) -> (i32, i32, i32) {
    %c0_i32 = arith.constant 0 : i32
    %c0_i32_0 = arith.constant 0 : i32
    return %arg0, %arg1, %c0_i32 : i32, i32, i32
  }
  func.func @transform_11(%arg0: i32, %arg1: i32, %arg2: i32) -> (i32, i32, i32) {
    %c0_i32 = arith.constant 0 : i32
    return %arg0, %arg1, %arg2 : i32, i32, i32
  }
}

</mosaic_0001>

<bundles_post_ra>
// kernel: tpu_custom_call.1
= control target key start
LH: loop header
LB: loop body
LE: loop exit
PB: predicated region body
PF: predicated region fallthrough
CT: control target
= control target key end

     0   :  { %s2129_s0 = inlined_call_operand.hbm [shape: f32[2,8,32], index: 0, kind: input, shape index: {}]   ;;  %s2130_s1 = inlined_call_operand.hbm [shape: f32[2,8,32], index: 1, kind: input, shape index: {}]   ;;  %s2131_s2 = inlined_call_operand.vmem [shape: f32[32,4], index: 2, kind: input, shape index: {}]   ;;  %s2132_s3 = inlined_call_operand.vmem [shape: f32[1,4], index: 3, kind: input, shape index: {}]   ;;  %s2133_s4 = inlined_call_operand.vmem [shape: f32[32,64], index: 4, kind: input, shape index: {}]   ;;  %s2134_s5 = inlined_call_operand.hbm [shape: f32[32,64], index: 5, kind: input, shape index: {}]   ;;  %s2135_s6 = inlined_call_operand.vmem [shape: f32[1,64], index: 6, kind: input, shape index: {}]   ;;  %s2136_s7 = inlined_call_operand.vmem [shape: f32[1,64], index: 7, kind: input, shape index: {}]   ;;  %s2137_s8 = inlined_call_operand.<no memory space> [shape: f32[1], index: 8, kind: input, shape index: {}]   ;;  %s2138_s9 = inlined_call_operand.vmem [shape: s32[2,8,1], index: 9, kind: output, shape index: {0}]   ;;  %s2139_s10 = inlined_call_operand.vmem [shape: s32[2,8,1], index: 10, kind: output, shape index: {1}]   ;;  %s2140_s11 = inlined_call_operand.hbm [shape: f32[2,8,8], index: 11, kind: output, shape index: {2}]  }
   0x1   :  { %2148 = sst [smem:[#allocation20_spill]] %s2134_s5 }
   0x2   :  { %2149 = sst [smem:[#allocation21_spill]] %s2139_s10 }
   0x3   :  { %2150 = sst [smem:[#allocation22_spill]] %s2140_s11 }
   0x4   :  { %17 = sst [smem:[#allocation3]] %s2137_s8 }
   0x5   :  { %18 = vsyncpa [#allocation5], 0 }
   0x6   :  { %20 = vsyncpa [#allocation5 + $0x1], 0 }
   0x7   :  { %21 = vsyncpa [#allocation8], 0 }
   0x8   :  { %23 = vsyncpa [#allocation8 + $0x1], 0 }
   0x9   :  { %24 = vsyncpa [#allocation6], 0 }
   0xa   :  { %26 = vsyncpa [#allocation6 + $0x1], 0  ;;  %s1802_s19 = smov 0   ;;  %s1804_s20 = smov 0  }
   0xb   :  { %s1806_s21 = smov 0   ;;  %s1808_s22 = smov 0  }
   0xc   :  { %s1810_s23 = smov 0   ;;  %s1812_s24 = smov 0  }
   0xd LB: > { %2151 = sst [smem:[#allocation15_spill]] %s1704_s19  ;;  %s1833_s8 = sadd.s32 4294967295, %s1724_s24   ;;  %s1724_s24 = sphi %s1812_s24, %s32_s24   ;;  %s1720_s23 = sphi %s1810_s23, %s2173_s23   ;;  %s1716_s22 = sphi %s1808_s22, %s2172_s22   ;;  %s1712_s21 = sphi %s1806_s21, %s2176_s21   ;;  %s1708_s20 = sphi %s1804_s20, %s2175_s20   ;;  %s1704_s19 = sphi %s1802_s19, %s2174_s19  }
   0xe   : > { %2152 = sst [smem:[#allocation16_spill]] %s1720_s23  ;;  %s1337_s25 = sadd.s32 4294967294, %s1724_s24  }
   0xf   : > { %p73_p0 = scmp.ne.s32.totalorder %s1708_s20, %s1704_s19  ;;  %p74_p1 = scmp.eq.s32.totalorder %s1833_s8, 0 }
  0x10   : > { %p338_p3 = scmp.eq.s32.totalorder %s1337_s25, 1  ;;  %p1338_p5 = scmp.ge.s32.totalorder %s1724_s24, 1 }
  0x11   : > { %p1842_p4 = por %p74_p1, %p73_p0  ;;  %p345_p7 = scmp.lt.s32.totalorder %s1724_s24, 3 }
  0x12   : > { %p1847_p6 = por %p338_p3, %p73_p0  ;;  %s1726_s29 = smov [#allocation9]  }
  0x13   : > { %p1852_p8 = pnand %p1338_p5, %p345_p7  ;;  %s366_s30 = sshll.u32 %s1726_s29, 4  ;;  %s367_s30 = int_to_ptr.vmem [resolvable:$true] %s366_s30 }
  0x14   : > { %s2154_s27 = scalar_select %p1847_p6, 1, 0 }
  0x15   : > { %p1428_p9 = pneg %p1852_p8  ;;  %s51_s13 = sadd.s32 1, %s1720_s23 }
  0x16   : > { %2155 = sst [smem:[#allocation17_spill]] %s2154_s27  ;;  %s1565_s14 = scalar_lea.vmem %s367_s30, 512 }
  0x17   : > { %p1861_p11 = pnand %p1428_p9, %p74_p1  ;;  %p1566_p13 = scmp.ne.s32.totalorder %s367_s30, %s1565_s14 }
  0x18   : > { %p1573_p5 = scmp.lt.s32.totalorder %s367_s30, %s367_s30  ;;  %p1574_p7 = scmp.lt.s32.totalorder %s1565_s14, %s1565_s14 }
  0x19   : > { %p1556_p12 = pneg %p1861_p11 }
  0x1a   : > { %p1575_p2 = por %p1574_p7, %p1573_p5 }
  0x1b   : > { %p1568_p0 = pnand %p1566_p13, %p1556_p12 }
  0x1d   : > { %p1569_p3 = pneg %p1568_p0 }
  0x1f   : > { %p1576_p6 = pnand %p1575_p2, %p1569_p3 }
  0x21   : > { %1579 = shalt.err (!%p1576_p6)
}
  0x22   : > { %s1727_s15 = smov 128   ;;  %s1728_s16 = smov 8  }
  0x23   : > { %s2158_s5 = sld [smem:[#allocation20_spill]]  ;;  %p53_p2 = scmp.ge.s32.totalorder %s51_s13, 2 }
  0x24   : > { %s60_s25 = sadd.s32 1, %s1712_s21  ;;  %p67_p6 = scmp.ne.s32.totalorder %s1712_s21, %s1708_s20 }
  0x25   : > { %p68_p9 = scmp.eq.s32.totalorder %s1724_s24, 0  ;;  %s2178_s13 = smov (%p53_p2, %s51_s13), 0 }
  0x26   : > { %2159 = sst [smem:[#allocation18_spill]] %s2178_s13  ;;  %p2161_p13 = scmp.eq.s32.totalorder %s1833_s8, 1 }
  0x27   : > { %p1879_p12 = por %p68_p9, %p67_p6  ;;  %s55_s14 = ssub.s32 %s1720_s23, %s2178_s13 }
  0x28   : > { %p1885_p0 = por %p2161_p13, %p67_p6  ;;  %p58_p3 = scmp.eq.s32.totalorder %s55_s14, 0 }
  0x29   : > { %1431 = dma.hbm_to_vmem [thread:$0]  (!%p1861_p11), %s2158_s5, 512, %s367_s30, [#allocation8], %s1727_s15, %s1727_s15, %s1728_s16  }
  0x2a   : > { %s2162_s12 = scalar_select %p1885_p0, 1, 0 }
  0x2b   : > { %p1444_p11 = scmp.lt.s32.totalorder %s1724_s24, 2  ;;  %s389_s30 = sand.u32 1, %s1712_s21  }
  0x2c   : > { %2163 = sst [smem:[#allocation19_spill]] %s2162_s12  ;;  %s1341_s15 = sshll.u32 %s389_s30, 3 }
  0x2d   : > { %s1894_s16 = scalar_select %p58_p3, %s1712_s21, %s60_s25  }
  0x2e   : > { %s1342_s17 = sshll.u32 %s1720_s23, 7  ;;  %s393_s19 = scalar_lea.vmem [#allocation4], %s1341_s15 }
  0x2f   : > { %s399_s27 = scalar_lea.hbm %s2129_s0, %s1342_s17  ;;  %s401_s11 = sshll.u32 %s393_s19, 4  ;;  %s402_s11 = int_to_ptr.vmem [resolvable:$true] %s401_s11 }
  0x30   : > { %p1902_p5 = pnand %p1444_p11, %p1879_p12  ;;  %s1909_s25 = scalar_lea.hbm %s2130_s1, %s1342_s17 }
  0x31   : > { %s408_s14 = sand.u32 1, %s1724_s24   ;;  %s390_s23 = scalar_lea.sflag [#allocation5], %s389_s30 }
  0x32   : > { %p1582_p7 = pneg %p1902_p5  ;;  %s1593_s5 = scalar_lea.vmem %s402_s11, 128 }
  0x33   : > { %p1594_p2 = scmp.ne.s32.totalorder %s402_s11, %s1593_s5  ;;  %s1729_s19 = smov [#allocation4]  }
  0x34   : > { %s1598_s29 = sshll.u32 %s1729_s19, 4  ;;  %s1599_s29 = int_to_ptr.vmem [resolvable:$false] %s1598_s29 }
  0x35   : > { %p1596_p6 = pnand %p1594_p2, %p1582_p7  ;;  %s1600_s18 = scalar_lea.vmem %s1599_s29, 256 }
  0x36   : > { %p1601_p12 = scmp.lt.s32.totalorder %s402_s11, %s1599_s29  ;;  %p1602_p13 = scmp.lt.s32.totalorder %s1600_s18, %s1593_s5 }
  0x37   : > { %p1597_p9 = pneg %p1596_p6 }
  0x38   : > { %p1603_p11 = por %p1602_p13, %p1601_p12 }
  0x3a   : > { %p1604_p3 = pnand %p1603_p11, %p1597_p9 }
  0x3c   : > { %1607 = shalt.err (!%p1604_p3)
}
  0x3d   : > { %1435 = dma.hbm_to_vmem [thread:$0]  (!%p1902_p5), %s399_s27, 128, %s402_s11, %s390_s23  }
  0x3e   : > { %s412_s13 = scalar_lea.vmem [#allocation7], %s1341_s15  ;;  %s409_s30 = scalar_lea.sflag [#allocation8], %s408_s14 }
  0x3f   : > { %s420_s12 = sshll.u32 %s412_s13, 4  ;;  %s1730_s19 = smov [#allocation7]   ;;  %s421_s12 = int_to_ptr.vmem [resolvable:$true] %s420_s12 }
  0x40   : > { %s1621_s17 = scalar_lea.vmem %s421_s12, 128  ;;  %s1626_s29 = sshll.u32 %s1730_s19, 4  ;;  %s1627_s29 = int_to_ptr.vmem [resolvable:$false] %s1626_s29 }
  0x41   : > { %p1622_p2 = scmp.ne.s32.totalorder %s421_s12, %s1621_s17  ;;  %s1628_s5 = scalar_lea.vmem %s1627_s29, 256 }
  0x42   : > { %p1629_p9 = scmp.lt.s32.totalorder %s421_s12, %s1627_s29  ;;  %p1630_p12 = scmp.lt.s32.totalorder %s1628_s5, %s1621_s17 }
  0x43   : > { %p1624_p6 = pnand %p1622_p2, %p1582_p7 }
  0x44   : > { %p1631_p13 = por %p1630_p12, %p1629_p9 }
  0x45   : > { %p1625_p10 = pneg %p1624_p6 }
  0x47   : > { %p1632_p11 = pnand %p1631_p13, %p1625_p10 }
  0x49   : > { %1635 = shalt.err (!%p1632_p11)
}
  0x4a   : > { %1438 = dma.hbm_to_vmem [thread:$0]  (!%p1902_p5), %s1909_s25, 128, %s421_s12, %s409_s30  }
  0x4b   : > { %429 = sbr.rel (%p1852_p8) target bundleno = 552 (0x228), region = 56  ;;  %s1928_s11 = sand.u32 (!%p1852_p8), 1, %s1708_s20  }
  0x4c   : > { %s1931_s23 = sshll.u32 (!%p1852_p8), %s1928_s11, 3  ;;  %s432_s27 = scalar_lea.sflag (!%p1852_p8), [#allocation5], %s1928_s11 }
  0x4d   : > { %s435_s15 = scalar_lea.vmem (!%p1852_p8), [#allocation4], %s1931_s23 }
  0x50   : > { %1687 = dma.done.wait (%p1842_p4), %s432_s27, 128  }
  0x51   : > { %1689 = vsyncadd (%p1842_p4), %s432_s27, 4294967168  ;;  %s440_s10 = sand.u32 1, %s1833_s8   ;;  %s444_s25 = scalar_lea.vmem [#allocation7], %s1931_s23 }
  0x52   : > { %s441_s28 = scalar_lea.sflag [#allocation8], %s440_s10 }
  0x53   : > { %1691 = dma.done.wait (%p1842_p4), %s441_s28, 128  }
  0x54   : > { %1693 = vsyncadd (%p1842_p4), %s441_s28, 4294967168 }
  0x55   : > { %1695 = dma.done.wait (%p74_p1), [#allocation8], 512  }
  0x56   : > { %1697 = vsyncadd (%p74_p1), [#allocation8], 4294966784  ;;  %v1731_v0 = vmov 0.0   ;;  %vm1732_vm0 = vmmov 0   ;;  %v528_v1 = vld [vmem:[%s2131_s2 + $0x18] sm:$0xff]  ;;  %v527_v3 = vld [vmem:[%s2131_s2 + $0x10] sm:$0xff]  ;;  %v792_v15 = vlaneseq }
  0x57   : > { %1385 = vmatprep.subr.mxu0 %v1731_v0  ;;  %1396 = vmatprep.subr.mxu1 %v1731_v0  ;;  %v626_v2 = vld [vmem:[%s2133_s4 + $0x18] sm:$0xff]  ;;  %v625_v4 = vld [vmem:[%s2133_s4 + $0x10] sm:$0xff]  ;;  %v526_v5 = vld [vmem:[%s2131_s2 + $0x8] sm:$0xff]  ;;  %vm536_vm1 = vcmask 261120   ;;  %v1733_v21 = vmov 1966171168  }
  0x58   : > { %1393 = vmatprep.mubr.msk.f32.mxu0 %vm1732_vm0, %v1731_v0  ;;  %1404 = vmatprep.mubr.msk.f32.mxu1 %vm1732_vm0, %v1731_v0  ;;  %v624_v6 = vld [vmem:[%s2133_s4 + $0x8] sm:$0xff]  ;;  %v525_v7 = vld [vmem:[%s2131_s2] sm:$0xff]  ;;  %v709_v11 = vld [vmem:[#allocation9 + $0x10] sm:$0xff]  ;;  %v793_v16 = vshrl.u32 %v792_v15, 7  ;;  %v1071_v17 = vand.u32 127, %v792_v15  ;;  %v790_v22 = vunpack.c.l.s4 %v1733_v21  ;;  %vm704_vm2 = vcmask 523264  }
  0x59   : > { %1386 = vmatpush3.msra.mxu0 %v528_v1  ;;  %1397 = vmatpush3.msra.mxu1 %v626_v2  ;;  %v623_v8 = vld [vmem:[%s2133_s4] sm:$0xff]  ;;  %v524_v9 = vld [vmem:[%s435_s15] sm:$0xff]  ;;  %s1736_s17 = smov 127   ;;  %s1737_s19 = smov 125   ;;  %vm618_vm4 = vcmask 7168   ;;  %vm1104_vm5 = vcmask 1041409  }
  0x5a   : > { %1387 = vmatprep.subr.mxu0 %v1731_v0  ;;  %1398 = vmatprep.subr.mxu1 %v1731_v0  ;;  %v710_v10 = vld [vmem:[#allocation9 + $0x18] sm:$0xff]  ;;  %v708_v12 = vld [vmem:[#allocation9 + $0x8] sm:$0xff]  ;;  %v707_v13 = vld [vmem:[#allocation9] sm:$0xff]  ;;  %v1983_v18 = vsub.s32 %v1071_v17, %v793_v16  ;;  %v791_v29 = vunpack.c.0.s8 %v790_v22  ;;  %v839_v35 = vsub.s32 0, %v793_v16  ;;  %s1004_s29 = sld [smem:[#allocation3]]  ;;  %p506_p1 = scmp.lt.s32.totalorder %s1716_s22, 1 }
  0x5b   : > { %1388 = vmatpush3.msra.mxu0 %v527_v3  ;;  %1399 = vmatpush3.msra.mxu1 %v625_v4  ;;  %v706_v14 = vld [vmem:[%s444_s25] sm:$0xff]  ;;  %s1734_s25 = smov 1   ;;  %s2165_s26 = sld [smem:[#allocation21_spill]]  ;;  %vm1106_vm6 = vcmask 1042434   ;;  %vm1108_vm7 = vcmask 1043459   ;;  %vm1110_vm8 = vcmask 1044484  }
  0x5c   : > { %1389 = vmatprep.subr.mxu0 %v1731_v0  ;;  %1400 = vmatprep.subr.mxu1 %v1731_v0  ;;  %v1352_v19 = vld [vmem:[%s2132_s3] ss:$0 sm:$0xff]  ;;  %v794_v30 = vsub.s32 %v791_v29, %v793_v16  ;;  %s507_s5 = scalar_select %p506_p1, %s1716_s22, 1  ;;  %vm1112_vm9 = vcmask 1045509   ;;  %vm1114_vm10 = vcmask 1046534   ;;  %vm1116_vm11 = vcmask 1047559  }
  0x5d   : > { %1390 = vmatpush3.msra.mxu0 %v526_v5  ;;  %1401 = vmatpush3.msra.mxu1 %v624_v6  ;;  %v1354_v20 = vld [vmem:[%s2135_s6] ss:$0 sm:$0xff]  ;;  %s1367_s12 = sshll.u32 %s1716_s22, 7  ;;  %vm1119_vm12 = vcmask 64512   ;;  %s1136_s22 = scalar_lea.sflag [#allocation6], %s1928_s11 }
  0x5e   : > { %1391 = vmatprep.subr.mxu0 %v1731_v0  ;;  %1402 = vmatprep.subr.mxu1 %v1731_v0  ;;  %s1350_s27 = sshll.u32 %s507_s5, 3 }
  0x5f   : > { %1392 = vmatpush3.msra.mxu0 %v525_v7  ;;  %1403 = vmatpush3.msra.mxu1 %v623_v8  ;;  %s512_s14 = scalar_lea.vmem %s2138_s9, %s1350_s27 }
  0x60   : > { %1394 = vmatmul.mubr.msk.f32.vlgmr.msra.gmra.mxu0 %vm536_vm1, %v524_v9  ;;  %1405 = vmatmul.mubr.msk.f32.vlgmr.msra.gmra.mxu1 %vm536_vm1, %v524_v9 }
  0x61   : > { %1407 = vmatprep.subr.mxu0 %v1731_v0  ;;  %1415 = vmatprep.mubr.msk.f32.mxu0 %vm1732_vm0, %v1731_v0  ;;  %s519_s13 = scalar_lea.vmem %s2165_s26, %s1350_s27  ;;  %s1738_s27 = smov [#allocation10]  }
  0x62   : > { %1408 = vmatpush3.msra.mxu0 %v710_v10  ;;  %s1640_s10 = sshll.u32 %s1738_s27, 4  ;;  %s1641_s10 = int_to_ptr.vmem [resolvable:$false] %s1640_s10 }
  0x63   : > { %1409 = vmatprep.subr.mxu0 %v1731_v0  ;;  %s1642_s28 = scalar_lea.vmem %s1641_s10, 256 }
  0x64   : > { %1410 = vmatpush3.msra.mxu0 %v709_v11 }
  0x65   : > { %1411 = vmatprep.subr.mxu0 %v1731_v0 }
  0x66   : > { %1412 = vmatpush3.msra.mxu0 %v708_v12 }
  0x67   : > { %1413 = vmatprep.subr.mxu0 %v1731_v0 }
  0x68   : > { %1414 = vmatpush3.msra.mxu0 %v707_v13 }
  0x69   : > { %1416 = vmatmul.mubr.msk.f32.vlgmr.msra.gmra.mxu0 %vm536_vm1, %v706_v14 }
 0x120   : > { %v606_v23 = vpop.f32.mrf.mxu0  ;;  %v700_v24 = vpop.f32.mrf.mxu1 }
 0x121   : > { %v1991_v25 = vadd.f32 %v1352_v19, %v606_v23  ;;  %v701_v26 = vadd.f32 %v1354_v20, %v700_v24 }
 0x122   : > { %v1406_v27 = vpop.f32.mrf.mxu1  ;;  %v1395_v28 = vpop.f32.mrf.mxu0 }
 0x123   : > { %705 = vst.msk [vmem:[#allocation2] sm:$0xff] %vm704_vm2, %v701_v26  ;;  %611 = vrot.lane.b32.xlu0 %v1991_v25, %s1734_s25  ;;  %s505_s25 = scalar_lea.vmem [#allocation10], %s1931_s23 }
 0x124   : > { %s1157_s8 = sshll.u32 %s505_s25, 4  ;;  %s1158_s8 = int_to_ptr.vmem [resolvable:$true] %s1157_s8 }
 0x125   : > { %s1636_s23 = scalar_lea.vmem %s1158_s8, 128  ;;  %p1643_p5 = scmp.lt.s32.totalorder %s1158_s8, %s1641_s10 }
 0x126   : > { %p1637_p4 = scmp.ne.s32.totalorder %s1158_s8, %s1636_s23  ;;  %p1644_p7 = scmp.lt.s32.totalorder %s1642_s28, %s1636_s23 }
 0x128   : > { %p1638_p8 = pnand %p1637_p4, %p1885_p0  ;;  %p1645_p3 = por %p1644_p7, %p1643_p5 }
 0x129   : > { %v1995_v31 = vpop.f32.mrf.mxu0 }
 0x12a   : > { %v785_v32 = vld [vmem:[#allocation2] sm:$0xff]  ;;  %p1639_p10 = pneg %p1638_p8 }
 0x12b   : > { %v1417_v33 = vpop.f32.mrf.mxu0  ;;  %v795_v34 = vrot.slane %v785_v32, %v794_v30  ;;  %v788_v36 = vcombine.high %v785_v32, %v785_v32 }
 0x12c   : > { %p1646_p2 = pnand %p1645_p3, %p1639_p10 }
 0x12d   : > { %v811_v37 = vrot.slane %v795_v34, %v794_v30  ;;  %v803_v38 = vcombine.high %v795_v34, %v795_v34  ;;  %v802_v39 = vrot.slane %v788_v36, %v794_v30 }
 0x12f   : > { %v840_v40 = vrot.slane %v811_v37, %v839_v35  ;;  %v825_v41 = vrot.slane %v803_v38, %v794_v30  ;;  %v833_v42 = vcombine.high %v811_v37, %v811_v37  ;;  %v818_v43 = vrot.slane %v802_v39, %v794_v30 }
 0x130   : > { %v804_v44 = vcombine.high %v802_v39, %v802_v39 }
 0x131   : > { %v1998_v45 = vadd.f32 %v840_v40, %v1995_v31  ;;  %v844_v46 = vrot.slane %v825_v41, %v839_v35  ;;  %v848_v47 = vrot.slane %v833_v42, %v839_v35  ;;  %v856_v48 = vrot.slane %v818_v43, %v839_v35 }
 0x132   : > { %v835_v49 = vcombine.high %v825_v41, %v825_v41  ;;  %v832_v50 = vrot.slane %v804_v44, %v794_v30  ;;  %v834_v51 = vcombine.high %v818_v43, %v818_v43 }
 0x133   : > { %v885_v52 = vmul.f32 %v1998_v45, %v1998_v45  ;;  %v2003_v53 = vadd.f32 %v844_v46, %v1995_v31  ;;  %v2006_v54 = vadd.f32 %v848_v47, %v1995_v31  ;;  %v2009_v55 = vadd.f32 %v856_v48, %v1995_v31 }
 0x134   : > { %v852_v56 = vrot.slane %v835_v49, %v839_v35  ;;  %v860_v57 = vrot.slane %v832_v50, %v839_v35  ;;  %v864_v58 = vrot.slane %v834_v51, %v839_v35  ;;  %v836_v28 = vcombine.high %v832_v50, %v832_v50 }
 0x135   : > { %v893_v59 = vmul.f32 %v885_v52, %v1998_v45  ;;  %v886_v60 = vmul.f32 %v2003_v53, %v2003_v53  ;;  %v887_v61 = vmul.f32 %v2006_v54, %v2006_v54  ;;  %v889_v62 = vmul.f32 %v2009_v55, %v2009_v55 }
 0x136   : > { %v2019_v63 = vadd.f32 %v852_v56, %v1995_v31  ;;  %v2024_v3 = vadd.f32 %v860_v57, %v1995_v31  ;;  %v2030_v6 = vadd.f32 %v864_v58, %v1995_v31  ;;  %v868_v33 = vrot.slane %v836_v28, %v839_v35 }
 0x137   : > { %v901_v0 = vmul.f32 0.044715, %v893_v59  ;;  %v894_v1 = vmul.f32 %v886_v60, %v2003_v53  ;;  %v895_v2 = vmul.f32 %v887_v61, %v2006_v54  ;;  %v897_v4 = vmul.f32 %v889_v62, %v2009_v55 }
 0x138   : > { %v888_v5 = vmul.f32 %v2019_v63, %v2019_v63  ;;  %v890_v10 = vmul.f32 %v2024_v3, %v2024_v3  ;;  %v891_v13 = vmul.f32 %v2030_v6, %v2030_v6  ;;  %v884_v34 = vadd.f32 %v868_v33, %v1995_v31  ;;  %v1357_v31 = vld [vmem:[%s2136_s7] ss:$0 sm:$0xff] }
 0x139   : > { %v909_v7 = vadd.f32 %v901_v0, %v1998_v45  ;;  %v902_v8 = vmul.f32 0.044715, %v894_v1  ;;  %v903_v9 = vmul.f32 0.044715, %v895_v2  ;;  %v905_v11 = vmul.f32 0.044715, %v897_v4 }
 0x13a   : > { %v896_v12 = vmul.f32 %v888_v5, %v2019_v63  ;;  %v898_v17 = vmul.f32 %v890_v10, %v2024_v3  ;;  %v899_v21 = vmul.f32 %v891_v13, %v2030_v6  ;;  %v892_v38 = vmul.f32 %v884_v34, %v884_v34 }
 0x13b   : > { %v917_v14 = vmul.f32 0.7978846, %v909_v7  ;;  %v910_v15 = vadd.f32 %v902_v8, %v2003_v53  ;;  %v911_v16 = vadd.f32 %v903_v9, %v2006_v54  ;;  %v913_v19 = vadd.f32 %v905_v11, %v2009_v55 }
 0x13c   : > { %v904_v20 = vmul.f32 0.044715, %v896_v12  ;;  %v906_v24 = vmul.f32 0.044715, %v898_v17  ;;  %v907_v30 = vmul.f32 0.044715, %v899_v21  ;;  %v900_v39 = vmul.f32 %v892_v38, %v884_v34 }
 0x13d   : > { %1506 = vtanh.f32 %v917_v14  ;;  %v918_v22 = vmul.f32 0.7978846, %v910_v15  ;;  %v919_v23 = vmul.f32 0.7978846, %v911_v16  ;;  %v921_v26 = vmul.f32 0.7978846, %v913_v19 }
 0x13e   : > { %v912_v27 = vadd.f32 %v904_v20, %v2019_v63  ;;  %v914_v29 = vadd.f32 %v906_v24, %v2024_v3  ;;  %v915_v37 = vadd.f32 %v907_v30, %v2030_v6  ;;  %v908_v41 = vmul.f32 0.044715, %v900_v39 }
 0x13f   : > { %1508 = vtanh.f32 %v918_v22  ;;  %v933_v44 = vmul.f32 0.5, %v1998_v45  ;;  %v934_v50 = vmul.f32 0.5, %v2003_v53  ;;  %v935_v56 = vmul.f32 0.5, %v2006_v54 }
 0x140   : > { %1510 = vtanh.f32 %v919_v23  ;;  %v920_v32 = vmul.f32 0.7978846, %v912_v27  ;;  %v922_v36 = vmul.f32 0.7978846, %v914_v29  ;;  %v923_v40 = vmul.f32 0.7978846, %v915_v37 }
 0x141   : > { %1512 = vtanh.f32 %v921_v26  ;;  %v916_v43 = vadd.f32 %v908_v41, %v884_v34  ;;  %v937_v1 = vmul.f32 0.5, %v2009_v55  ;;  %v936_v54 = vmul.f32 0.5, %v2019_v63 }
 0x142   : > { %1514 = vtanh.f32 %v920_v32  ;;  %v938_v13 = vmul.f32 0.5, %v2024_v3  ;;  %v939_v19 = vmul.f32 0.5, %v2030_v6  ;;  %v940_v23 = vmul.f32 0.5, %v884_v34 }
 0x143   : > { %1516 = vtanh.f32 %v922_v36  ;;  %v924_v35 = vmul.f32 0.7978846, %v916_v43  ;;  %v1735_v30 = vmov 0   ;;  %v1005_v34 = vstv %s1004_s29  ;;  %s2167_s29 = sld [smem:[#allocation22_spill]] }
 0x144   : > { %1518 = vtanh.f32 %v923_v40 }
 0x145   : > { %1520 = vtanh.f32 %v924_v35 }
 0x149   : > { %s2087_s5 = scalar_lea.hbm %s2167_s29, %s1367_s12 }
 0x14a   : > { %v1507_v42 = vpop.eup %1506 }
 0x14b   : > { %v941_v46 = vadd.f32 1.0, %v1507_v42 }
 0x14c   : > { %v1509_v47 = vpop.eup %1508 }
 0x14d   : > { %v1511_v48 = vpop.eup %1510  ;;  %v949_v49 = vmul.f32 %v941_v46, %v933_v44  ;;  %v942_v51 = vadd.f32 1.0, %v1509_v47 }
 0x14e   : > { %v1513_v52 = vpop.eup %1512  ;;  %v943_v57 = vadd.f32 1.0, %v1511_v48 }
 0x14f   : > { %v963_v58 = vmul.f32 %v1357_v31, %v949_v49  ;;  %v950_v59 = vmul.f32 %v942_v51, %v934_v50  ;;  %v945_v45 = vadd.f32 1.0, %v1513_v52  ;;  %v1515_v60 = vpop.eup %1514 }
 0x150   : > { %v951_v61 = vmul.f32 %v943_v57, %v935_v56  ;;  %v944_v5 = vadd.f32 1.0, %v1515_v60  ;;  %v1517_v7 = vpop.eup %1516 }
 0x151   : > { %v972_v62 = vsel %vm704_vm2, %v963_v58, 0.0  ;;  %v964_v0 = vmul.f32 %v1357_v31, %v950_v59  ;;  %v953_v4 = vmul.f32 %v945_v45, %v937_v1  ;;  %v946_v11 = vadd.f32 1.0, %v1517_v7  ;;  %v1519_v12 = vpop.eup %1518 }
 0x152   : > { %973 = vadd.xlane.f32.xlu0 %v972_v62  ;;  %v965_v53 = vmul.f32 %v1357_v31, %v951_v61  ;;  %v952_v10 = vmul.f32 %v944_v5, %v936_v54  ;;  %v947_v16 = vadd.f32 1.0, %v1519_v12  ;;  %v1521_v17 = vpop.eup %1520 }
 0x153   : > { %v975_v2 = vsel %vm704_vm2, %v964_v0, 0.0  ;;  %v967_v9 = vmul.f32 %v1357_v31, %v953_v4  ;;  %v954_v15 = vmul.f32 %v946_v11, %v938_v13  ;;  %v948_v22 = vadd.f32 1.0, %v1521_v17 }
 0x154   : > { %976 = vadd.xlane.f32.xlu1 %v975_v2  ;;  %v978_v8 = vsel %vm704_vm2, %v965_v53, 0.0  ;;  %v966_v14 = vmul.f32 %v1357_v31, %v952_v10  ;;  %v955_v21 = vmul.f32 %v947_v16, %v939_v19 }
 0x155   : > { %v984_v55 = vsel %vm704_vm2, %v967_v9, 0.0  ;;  %v968_v20 = vmul.f32 %v1357_v31, %v954_v15  ;;  %v956_v3 = vmul.f32 %v948_v22, %v940_v23 }
 0x156   : > { %v981_v63 = vsel %vm704_vm2, %v966_v14, 0.0  ;;  %v969_v26 = vmul.f32 %v1357_v31, %v955_v21 }
 0x157   : > { %v987_v24 = vsel %vm704_vm2, %v968_v20, 0.0  ;;  %v970_v28 = vmul.f32 %v1357_v31, %v956_v3 }
 0x158   : > { %979 = vadd.xlane.f32.xlu1 %v978_v8  ;;  %v990_v27 = vsel %vm704_vm2, %v969_v26, 0.0 }
 0x159   : > { %v993_v29 = vsel %vm704_vm2, %v970_v28, 0.0 }
 0x15c   : > { %985 = vadd.xlane.f32.xlu1 %v984_v55 }
 0x160   : > { %982 = vadd.xlane.f32.xlu1 %v981_v63 }
 0x164   : > { %988 = vadd.xlane.f32.xlu1 %v987_v24 }
 0x168   : > { %991 = vadd.xlane.f32.xlu1 %v990_v27 }
 0x16c   : > { %994 = vadd.xlane.f32.xlu1 %v993_v29 }
 0x195   : > { %v612_v6 = vpop.permute.xlu0 %611 }
 0x196   : > { %vm614_vm3 = vcmp.gt.f32.partialorder %v1991_v25, %v612_v6 }
 0x197   : > { %v615_v32 = vsel %vm614_vm3, 1, %v1735_v30 }
 0x198   : > { %616 = vrot.lane.b32.xlu1 %v615_v32, %s1736_s17  ;;  %620 = vrot.lane.b32.xlu0 %v615_v32, %s1737_s19 }
 0x1db   : > { %v974_v36 = vpop.xlane.xlu0 %973 }
 0x1dc   : > { %v1006_v38 = vadd.f32 %v1005_v34, %v974_v36 }
 0x1dd   : > { %v977_v33 = vpop.xlane.xlu1 %976 }
 0x1de   : > { %v1007_v39 = vadd.f32 %v1005_v34, %v977_v33  ;;  %v1358_v42 = vmul.f32 -1.442695, %v1006_v38 }
 0x1e0   : > { %v1359_v43 = vmul.f32 -1.442695, %v1007_v39  ;;  %1522 = vpow2.f32 %v1358_v42 }
 0x1e1   : > { %v980_v37 = vpop.xlane.xlu1 %979 }
 0x1e2   : > { %v1008_v40 = vadd.f32 %v1005_v34, %v980_v37  ;;  %1524 = vpow2.f32 %v1359_v43 }
 0x1e4   : > { %v1360_v44 = vmul.f32 -1.442695, %v1008_v40 }
 0x1e5   : > { %v986_v41 = vpop.xlane.xlu1 %985 }
 0x1e6   : > { %v1010_v25 = vadd.f32 %v1005_v34, %v986_v41  ;;  %1526 = vpow2.f32 %v1360_v44 }
 0x1e8   : > { %v1362_v48 = vmul.f32 -1.442695, %v1010_v25 }
 0x1e9   : > { %v983_v46 = vpop.xlane.xlu1 %982 }
 0x1ea   : > { %v1009_v47 = vadd.f32 %v1005_v34, %v983_v46 }
 0x1ec   : > { %v1361_v31 = vmul.f32 -1.442695, %v1009_v47 }
 0x1ed   : > { %v989_v35 = vpop.xlane.xlu1 %988  ;;  %v1523_v59 = vpop.eup %1522 }
 0x1ee   : > { %1528 = vpow2.f32 %v1361_v31  ;;  %v1011_v49 = vadd.f32 %v1005_v34, %v989_v35  ;;  %v1038_v62 = vadd.f32 1.0, %v1523_v59 }
 0x1ef   : > { %1530 = vpow2.f32 %v1362_v48  ;;  %v1525_v45 = vpop.eup %1524 }
 0x1f0   : > { %v1363_v50 = vmul.f32 -1.442695, %v1011_v49  ;;  %v1039_v1 = vadd.f32 1.0, %v1525_v45 }
 0x1f1   : > { %v992_v51 = vpop.xlane.xlu1 %991 }
 0x1f2   : > { %v1012_v52 = vadd.f32 %v1005_v34, %v992_v51  ;;  %1532 = vpow2.f32 %v1363_v50 }
 0x1f3   : > { %v1527_v61 = vpop.eup %1526 }
 0x1f4   : > { %v1364_v56 = vmul.f32 -1.442695, %v1012_v52  ;;  %v1040_v2 = vadd.f32 1.0, %v1527_v61 }
 0x1f5   : > { %v995_v57 = vpop.xlane.xlu1 %994 }
 0x1f6   : > { %v1013_v58 = vadd.f32 %v1005_v34, %v995_v57  ;;  %1534 = vpow2.f32 %v1364_v56 }
 0x1f8   : > { %v1365_v60 = vmul.f32 -1.442695, %v1013_v58 }
 0x1fa   : > { %1536 = vpow2.f32 %v1365_v60 }
 0x1fb   : > { %v1529_v0 = vpop.eup %1528  ;;  %1538 = vrcp.f32 %v1038_v62 }
 0x1fc   : > { %v1041_v53 = vadd.f32 1.0, %v1529_v0  ;;  %v1531_v4 = vpop.eup %1530  ;;  %1540 = vrcp.f32 %v1039_v1 }
 0x1fd   : > { %1542 = vrcp.f32 %v1040_v2  ;;  %v1042_v54 = vadd.f32 1.0, %v1531_v4 }
 0x1fe   : > { %1544 = vrcp.f32 %v1041_v53 }
 0x1ff   : > { %v1533_v5 = vpop.eup %1532 }
 0x200   : > { %v1043_v7 = vadd.f32 1.0, %v1533_v5 }
 0x202   : > { %1546 = vrcp.f32 %v1043_v7 }
 0x203   : > { %v1535_v8 = vpop.eup %1534  ;;  %1548 = vrcp.f32 %v1042_v54 }
 0x204   : > { %v1044_v9 = vadd.f32 1.0, %v1535_v8 }
 0x206   : > { %1550 = vrcp.f32 %v1044_v9 }
 0x207   : > { %v1537_v10 = vpop.eup %1536 }
 0x208   : > { %v1045_v11 = vadd.f32 1.0, %v1537_v10  ;;  %v1539_v55 = vpop.eup %1538 }
 0x209   : > { %v1541_v14 = vpop.eup %1540  ;;  %v1075_v63 = vrot.slane %v1539_v55, %v1983_v18 }
 0x20a   : > { %v617_v12 = vpop.permute.xlu1 %616  ;;  %v621_v13 = vpop.permute.xlu0 %620  ;;  %1552 = vrcp.f32 %v1045_v11  ;;  %v1079_v17 = vrot.slane %v1541_v14, %v1983_v18 }
 0x20b   : > { %619 = vst.msk [vmem:[%s512_s14] sm:$0xff] %vm618_vm4, %v617_v12  ;;  %622 = vst.msk [vmem:[%s519_s13] sm:$0xff] %vm618_vm4, %v621_v13  ;;  %v1543_v15 = vpop.eup %1542 }
 0x20c   : > { %v1545_v16 = vpop.eup %1544  ;;  %v1083_v19 = vrot.slane %v1543_v15, %v1983_v18  ;;  %v1105_v23 = vsel %vm1104_vm5, %v1079_v17, %v1075_v63 }
 0x20d   : > { %v1087_v20 = vrot.slane %v1545_v16, %v1983_v18 }
 0x20e   : > { %v1107_v26 = vsel %vm1106_vm6, %v1083_v19, %v1105_v23 }
 0x20f   : > { %v1547_v21 = vpop.eup %1546  ;;  %v1109_v27 = vsel %vm1108_vm7, %v1087_v20, %v1107_v26 }
 0x210   : > { %v1549_v22 = vpop.eup %1548  ;;  %v1095_v3 = vrot.slane %v1547_v21, %v1983_v18 }
 0x211   : > { %v1091_v28 = vrot.slane %v1549_v22, %v1983_v18 }
 0x213   : > { %v1551_v24 = vpop.eup %1550  ;;  %v1111_v30 = vsel %vm1110_vm8, %v1091_v28, %v1109_v27 }
 0x214   : > { %v1099_v29 = vrot.slane %v1551_v24, %v1983_v18  ;;  %v1113_v33 = vsel %vm1112_vm9, %v1095_v3, %v1111_v30 }
 0x216   : > { %v1115_v34 = vsel %vm1114_vm10, %v1099_v29, %v1113_v33 }
 0x217   : > { %v1553_v6 = vpop.eup %1552 }
 0x218   : > { %v1103_v32 = vrot.slane %v1553_v6, %v1983_v18 }
 0x21a   : > { %v1117_v36 = vsel %vm1116_vm11, %v1103_v32, %v1115_v34 }
 0x21b   : > { %1120 = vst.msk [vmem:[%s505_s25] sm:$0xff] %vm1119_vm12, %v1117_v36 }
 0x21c   : > { %1649 = shalt.err (!%p1646_p2)
}
 0x21d   : > { %s1650_s14 = scalar_lea.hbm %s2087_s5, 128  ;;  %s1654_s15 = scalar_lea.hbm %s2167_s29, 256 }
 0x21e   : > { %p1651_p6 = scmp.ne.s32.totalorder %s2087_s5, %s1650_s14  ;;  %p1655_p13 = scmp.lt.s32.totalorder %s2087_s5, %s2167_s29 }
 0x21f   : > { %p1656_p11 = scmp.lt.s32.totalorder %s1654_s15, %s1650_s14 }
 0x220   : > { %p1652_p9 = pnand %p1651_p6, %p1885_p0 }
 0x221   : > { %p1657_p1 = por %p1656_p11, %p1655_p13 }
 0x222   : > { %p1653_p12 = pneg %p1652_p9 }
 0x224   : > { %p1658_p4 = pnand %p1657_p1, %p1653_p12 }
 0x226   : > { %1661 = shalt.err (!%p1658_p4)
}
 0x227   : > { %1426 = dma.vmem_to_hbm [thread:$0]  (%p1885_p0), %s1158_s8, 128, %s2087_s5, %s1136_s22  }
 0x228 PF: > { %s2168_s12 = sld [smem:[#allocation15_spill]]  ;;  %p2171_p10 = scmp.ge.s32.totalorder %s1724_s24, 2 }
 0x229   : > { %s2169_s25 = sld [smem:[#allocation17_spill]] }
 0x22e   : > { %s1189_s17 = sand.u32 1, %s2168_s12  }
 0x22f   : > { %p2170_p8 = scmp.ne.s32.totalorder %s2169_s25, 0  ;;  %s1190_s19 = scalar_lea.sflag [#allocation6], %s1189_s17 }
 0x231   : > { %p1440_p5 = pnand %p2171_p10, %p2170_p8 }
 0x233   : > { %p1441_p7 = pneg %p1440_p5 }
 0x235   : > { %1699 = dma.done.wait (%p1441_p7), %s1190_s19, 128  }
 0x236   : > { %1701 = vsyncadd (%p1441_p7), %s1190_s19, 4294967168  ;;  %s32_s24 = sadd.s32 1, %s1724_s24   ;;  %s2172_s22 = sld [smem:[#allocation16_spill]] }
 0x237   : > { %p29_p3 = scmp.ge.s32.totalorder %s32_s24, 4   ;;  %s2173_s23 = sld [smem:[#allocation18_spill]] }
 0x238   : > { %s2174_s19 = smov %s1708_s20  ;;  %s2175_s20 = smov %s1712_s21 }
 0x239   : > { %s2176_s21 = smov %s1894_s16  ;;  %31 = sbr.rel (!%p29_p3) target bundleno = 13 (0xd), region = 146 }
 0x23e   :  { %1195 = vsyncpa [#allocation5], 1 }
 0x23f   :  { %1197 = vsyncpa [#allocation5 + $0x1], 1 }
 0x240   :  { %1198 = vsyncpa [#allocation8], 1 }
 0x241   :  { %1200 = vsyncpa [#allocation8 + $0x1], 1 }
 0x242   :  { %1201 = vsyncpa [#allocation6], 1 }
 0x243   :  { %1203 = vsyncpa [#allocation6 + $0x1], 1 }

</bundles_post_ra>
